<compile_context>
chip_gen: v7x
topology: tpu7x:2x2x1
jax: 0.10.0
libtpu: 0.0.40
codegen_flags: <defaults>
</compile_context>

<pallas_src>
import math

import numpy as np
import jax
import jax.numpy as jnp
from jax.experimental import pallas as pl
from jax.experimental.pallas import tpu as pltpu

EMB_DIM = 64                     # TimeEmbbeding default
POS_EMB_DIM = EMB_DIM // 4       # 16 (SinusoidalPosEmb emb_dim)
HALF_DIM = POS_EMB_DIM // 2      # 8
DOWNSCALE_FREQ_SHIFT = 1
MAX_PERIOD = 10000.0
NEG_LOG_SCALE = -(math.log(MAX_PERIOD) / (HALF_DIM - DOWNSCALE_FREQ_SHIFT))

# Compile-time constant tables (passed to the kernel as inputs, NOT captured):
#   freqs16[j] = exp(NEG_LOG_SCALE * (j mod 8))          (lanes 0..7 == 8..15)
#   phase16[j] = 0 for j < 8, pi/2 for j >= 8            (cos(x) = sin(x+pi/2))
# Together they reproduce torch.cat((sin, cos), dim=-1) with a single sin and
# no lane-axis concatenate. flip_sin_to_cos=False, emb_dim even -> no flip/pad.
_FREQS16_NP = np.exp(
    NEG_LOG_SCALE * (np.arange(POS_EMB_DIM) % HALF_DIM)
).astype(np.float32).reshape(1, POS_EMB_DIM)
_PHASE16_NP = np.concatenate(
    [np.zeros(HALF_DIM), np.full(HALF_DIM, np.pi / 2.0)]
).astype(np.float32).reshape(1, POS_EMB_DIM)


def time_embedding_kernel(freqs_ref, phase_ref, t_ref,
                          w1t_ref, b1_ref, w2t_ref, b2_ref, o_ref):
    """Whole forward pass in one kernel.

    freqs_ref: (1, POS_EMB_DIM)        float32   sinusoid frequencies
    phase_ref: (1, POS_EMB_DIM)        float32   0 / pi/2 phase (sin vs cos)
    t_ref:     (B, 1)                  float32   timesteps
    w1t_ref:   (POS_EMB_DIM, EMB_DIM)  float32   [in, out] layout (pre-transposed)
    b1_ref:    (1, EMB_DIM)            float32
    w2t_ref:   (EMB_DIM, EMB_DIM)      float32   [in, out] layout (pre-transposed)
    b2_ref:    (1, EMB_DIM)            float32
    o_ref:     (B, EMB_DIM)            float32
    """
    # --- SinusoidalPosEmb: one vreg layout, single transcendental per lane ---
    arg = t_ref[...] * freqs_ref[...] + phase_ref[...]        # (B,1)*(1,16)+(1,16) -> (B,16)
    pos_emb = jnp.sin(arg)                                     # lanes>=8 are cos via phase

    # --- Linear(16 -> 64) + SiLU (plain x @ W, lane-aligned bias add) ---
    h = jnp.dot(pos_emb, w1t_ref[...],
                preferred_element_type=jnp.float32) + b1_ref[...]
    h = h * jax.nn.sigmoid(h)                                  # SWISH / SiLU

    # --- Linear(64 -> 64) ---
    out = jnp.dot(h, w2t_ref[...],
                  preferred_element_type=jnp.float32) + b2_ref[...]
    o_ref[...] = out.astype(o_ref.dtype)


def prepare_params(w1, b1, w2, b2):
    """One-time parameter preprocessing (call ONCE at model load, outside jit).

    Takes PyTorch nn.Linear layouts:
      w1: [EMB_DIM, POS_EMB_DIM]  b1: [EMB_DIM]
      w2: [EMB_DIM, EMB_DIM]      b2: [EMB_DIM]
    Returns [in, out]-layout weights and (1, EMB_DIM) biases so the hot path
    has zero transposes / relayouts.
    """
    w1t = jnp.asarray(w1, jnp.float32).T                       # (16, 64)
    w2t = jnp.asarray(w2, jnp.float32).T                       # (64, 64)
    b1r = jnp.asarray(b1, jnp.float32).reshape(1, EMB_DIM)
    b2r = jnp.asarray(b2, jnp.float32).reshape(1, EMB_DIM)
    return w1t, b1r, w2t, b2r


@jax.jit
def time_embedding(time_vec, w1t, b1r, w2t, b2r):
    """time_vec: [B] float32 -> [B, EMB_DIM] float32.

    Parameters must come from `prepare_params` (one-time, outside jit)."""
    b = time_vec.shape[0]
    t2d = time_vec.astype(jnp.float32).reshape(b, 1)

    freqs = jnp.asarray(_FREQS16_NP)                           # folded into HLO consts
    phase = jnp.asarray(_PHASE16_NP)

    flops = 2 * b * POS_EMB_DIM * EMB_DIM + 2 * b * EMB_DIM * EMB_DIM + 6 * b * EMB_DIM
    transcendentals = b * POS_EMB_DIM + b * EMB_DIM            # sin + sigmoid-exp
    bytes_accessed = 4 * (b + 2 * POS_EMB_DIM
                          + POS_EMB_DIM * EMB_DIM + EMB_DIM
                          + EMB_DIM * EMB_DIM + EMB_DIM
                          + b * EMB_DIM)

    vmem_spec = pl.BlockSpec(memory_space=pltpu.MemorySpace.VMEM)
    return pl.pallas_call(
        time_embedding_kernel,
        out_shape=jax.ShapeDtypeStruct((b, EMB_DIM), jnp.float32),
        in_specs=[vmem_spec] * 7,
        out_specs=vmem_spec,
        cost_estimate=pl.CostEstimate(flops=flops,
                                      transcendentals=transcendentals,
                                      bytes_accessed=bytes_accessed),
    )(freqs, phase, t2d, w1t, b1r, w2t, b2r)


def _reference(time_vec, w1, b1, w2, b2):
    """Pure-JAX reference mirroring the PyTorch forward (PyTorch layouts)."""
    half = POS_EMB_DIM // 2
    emb = math.log(MAX_PERIOD) / (half - DOWNSCALE_FREQ_SHIFT)
    freqs = jnp.exp(-emb * jnp.arange(half, dtype=jnp.float32))
    arg = time_vec[:, None] * freqs[None, :]
    pe = jnp.concatenate([jnp.sin(arg), jnp.cos(arg)], axis=-1)
    h = pe @ w1.T + b1
    h = h * jax.nn.sigmoid(h)
    return h @ w2.T + b2


if __name__ == "__main__":
    key = jax.random.PRNGKey(0)
    k_t, k_w1, k_b1, k_w2, k_b2 = jax.random.split(key, 5)

    B = 8
    time_vec = jax.random.uniform(k_t, (B,), jnp.float32) * 1000.0  # timesteps

    # Deterministic synthetic parameters in PyTorch nn.Linear weight shapes.
    w1 = jax.random.normal(k_w1, (EMB_DIM, POS_EMB_DIM), jnp.float32) * 0.05
    b1 = jax.random.normal(k_b1, (EMB_DIM,), jnp.float32) * 0.01
    w2 = jax.random.normal(k_w2, (EMB_DIM, EMB_DIM), jnp.float32) * 0.05
    b2 = jax.random.normal(k_b2, (EMB_DIM,), jnp.float32) * 0.01

    # One-time parameter preprocessing (outside jit / the hot loop).
    w1t, b1r, w2t, b2r = prepare_params(w1, b1, w2, b2)

    out = time_embedding(time_vec, w1t, b1r, w2t, b2r)
    out = jax.block_until_ready(out)

    ref = _reference(time_vec, w1, b1, w2, b2)
    assert out.shape == (B, EMB_DIM)
    assert jnp.allclose(out, ref, atol=1e-4, rtol=1e-4)

    print("KERNEL_OK")
</pallas_src>

<mosaic_0001>
module attributes {stable_mosaic.version = 11 : i64} {
  func.func @time_embedding_kernel(%arg0: memref<1x16xf32, #tpu.memory_space<vmem>>, %arg1: memref<1x16xf32, #tpu.memory_space<vmem>>, %arg2: memref<8x1xf32, #tpu.memory_space<vmem>>, %arg3: memref<16x64xf32, #tpu.memory_space<vmem>>, %arg4: memref<1x64xf32, #tpu.memory_space<vmem>>, %arg5: memref<64x64xf32, #tpu.memory_space<vmem>>, %arg6: memref<1x64xf32, #tpu.memory_space<vmem>>, %arg7: memref<8x64xf32, #tpu.memory_space<vmem>>) attributes {dimension_semantics = [], scalar_prefetch = 0 : i64, scratch_operands = 0 : i64, tpu.core_type = #tpu.core_type<tc>} {
    %c0 = arith.constant 0 : index
    %c0_0 = arith.constant 0 : index
    %0 = vector.load %arg2[%c0, %c0_0] : memref<8x1xf32, #tpu.memory_space<vmem>>, vector<8x1xf32>
    %c0_1 = arith.constant 0 : index
    %c0_2 = arith.constant 0 : index
    %1 = vector.load %arg0[%c0_1, %c0_2] : memref<1x16xf32, #tpu.memory_space<vmem>>, vector<1x16xf32>
    %2 = vector.broadcast %0 : vector<8x1xf32> to vector<8x16xf32>
    %3 = vector.broadcast %1 : vector<1x16xf32> to vector<8x16xf32>
    %4 = arith.mulf %2, %3 : vector<8x16xf32>
    %c0_3 = arith.constant 0 : index
    %c0_4 = arith.constant 0 : index
    %5 = vector.load %arg1[%c0_3, %c0_4] : memref<1x16xf32, #tpu.memory_space<vmem>>, vector<1x16xf32>
    %6 = vector.broadcast %5 : vector<1x16xf32> to vector<8x16xf32>
    %7 = arith.addf %4, %6 : vector<8x16xf32>
    %8 = math.sin %7 : vector<8x16xf32>
    %c0_5 = arith.constant 0 : index
    %c0_6 = arith.constant 0 : index
    %9 = vector.load %arg3[%c0_5, %c0_6] : memref<16x64xf32, #tpu.memory_space<vmem>>, vector<16x64xf32>
    %cst = arith.constant dense<0.000000e+00> : vector<8x64xf32>
    %10 = tpu.matmul %8, %9, %cst {dimension_numbers = #tpu.dot_dimension_numbers<[1], [0], [0], [1], [0, 0, 1, 1], [], []>} : vector<8x16xf32>, vector<16x64xf32>, vector<8x64xf32> -> vector<8x64xf32>
    %c0_7 = arith.constant 0 : index
    %c0_8 = arith.constant 0 : index
    %11 = vector.load %arg4[%c0_7, %c0_8] : memref<1x64xf32, #tpu.memory_space<vmem>>, vector<1x64xf32>
    %12 = vector.broadcast %11 : vector<1x64xf32> to vector<8x64xf32>
    %13 = arith.addf %10, %12 : vector<8x64xf32>
    %14 = arith.negf %13 : vector<8x64xf32>
    %15 = math.exp %14 : vector<8x64xf32>
    %cst_9 = arith.constant 1.000000e+00 : f32
    %16 = vector.broadcast %cst_9 : f32 to vector<8x64xf32>
    %17 = arith.addf %16, %15 : vector<8x64xf32>
    %18 = arith.divf %16, %17 : vector<8x64xf32>
    %19 = arith.mulf %13, %18 : vector<8x64xf32>
    %c0_10 = arith.constant 0 : index
    %c0_11 = arith.constant 0 : index
    %20 = vector.load %arg5[%c0_10, %c0_11] : memref<64x64xf32, #tpu.memory_space<vmem>>, vector<64x64xf32>
    %cst_12 = arith.constant dense<0.000000e+00> : vector<8x64xf32>
    %21 = tpu.matmul %19, %20, %cst_12 {dimension_numbers = #tpu.dot_dimension_numbers<[1], [0], [0], [1], [0, 0, 1, 1], [], []>} : vector<8x64xf32>, vector<64x64xf32>, vector<8x64xf32> -> vector<8x64xf32>
    %c0_13 = arith.constant 0 : index
    %c0_14 = arith.constant 0 : index
    %22 = vector.load %arg6[%c0_13, %c0_14] : memref<1x64xf32, #tpu.memory_space<vmem>>, vector<1x64xf32>
    %23 = vector.broadcast %22 : vector<1x64xf32> to vector<8x64xf32>
    %24 = arith.addf %21, %23 : vector<8x64xf32>
    %c0_15 = arith.constant 0 : index
    %c0_16 = arith.constant 0 : index
    %25 = vector.load %arg7[%c0_15, %c0_16] : memref<8x64xf32, #tpu.memory_space<vmem>>, vector<8x64xf32>
    tpu.vector_store %arg7[%c0_15, %c0_16], %24 {strides = array<i32>} : memref<8x64xf32, #tpu.memory_space<vmem>>, vector<8x64xf32>,
    return
  }
}

</mosaic_0001>

<bundles_post_ra>
// kernel: time_embedding.1
= control target key start
LH: loop header
LB: loop body
LE: loop exit
PB: predicated region body
PF: predicated region fallthrough
CT: control target
= control target key end

     0   :  { %12 = vsyncpa [#allocation3], 0  ;;  %s626_s0 = inlined_call_operand.vmem [shape: f32[1,16], index: 0, kind: input, shape index: {}]   ;;  %s627_s1 = inlined_call_operand.vmem [shape: f32[1,16], index: 1, kind: input, shape index: {}]   ;;  %s628_s2 = inlined_call_operand.vmem [shape: f32[8,1], index: 2, kind: input, shape index: {}]   ;;  %s629_s3 = inlined_call_operand.vmem [shape: f32[16,64], index: 3, kind: input, shape index: {}]   ;;  %s630_s4 = inlined_call_operand.vmem [shape: f32[1,64], index: 4, kind: input, shape index: {}]   ;;  %s631_s5 = inlined_call_operand.hbm [shape: f32[64,64], index: 5, kind: input, shape index: {}]   ;;  %s632_s6 = inlined_call_operand.vmem [shape: f32[1,64], index: 6, kind: input, shape index: {}]   ;;  %s633_s7 = inlined_call_operand.hbm [shape: f32[8,64], index: 7, kind: output, shape index: {}]  }
   0x1   :  { %13 = vsyncpa [#allocation4], 0  ;;  %s501_s24 = smov [#allocation2]   ;;  %s453_s28 = scalar_lea.hbm %s631_s5, 1024 }
   0x2   :  { %s29_s25 = sshll.u32 %s501_s24, 4  ;;  %p454_p0 = scmp.ne.s32.totalorder %s631_s5, %s453_s28  ;;  %s30_s25 = int_to_ptr.vmem [resolvable:$true] %s29_s25 }
   0x3   :  { %p457_p1 = scmp.lt.u32.totalorder %s453_s28, %s631_s5 }
   0x5   :  { %p459_p2 = pnand %p457_p1, %p454_p0 }
   0x7   :  { %462 = shalt.err (!%p459_p2)
}
   0x8   :  { %s463_s10 = scalar_lea.vmem %s30_s25, 1024  ;;  %p468_p4 = scmp.lt.s32.totalorder %s30_s25, %s30_s25 }
   0x9   :  { %p464_p3 = scmp.ne.s32.totalorder %s30_s25, %s463_s10  ;;  %p469_p5 = scmp.lt.s32.totalorder %s463_s10, %s463_s10 }
   0xb   :  { %p470_p6 = por %p469_p5, %p468_p4 }
   0xd   :  { %p471_p7 = pnand %p470_p6, %p464_p3 }
   0xf   :  { %474 = shalt.err (!%p471_p7)
}
  0x10   :  { %s502_s11 = smov 128   ;;  %s503_s12 = smov 8  }
  0x11   :  { %35 = dma.hbm_to_vmem [thread:$0]  %s631_s5, 1024, %s30_s25, [#allocation3], %s502_s11, %s502_s11, %s503_s12  }
  0x12   :  { %497 = dma.done.wait [#allocation3], 1024  }
  0x13   :  { %498 = vsyncadd [#allocation3], 4294966272  ;;  %v504_v0 = vmov 0   ;;  %v41_v1 = vld [vmem:[%s628_s2] sm:$0xff]  ;;  %v168_v3 = vld [vmem:[%s629_s3 + $0x8] sm:$0xff]  ;;  %v505_v4 = vmov 0.0|0.0  }
  0x14   :  { %444 = vset.pattern.permute.xlu0 %v504_v0  ;;  %v167_v2 = vld [vmem:[%s629_s3] sm:$0xff]  ;;  %411 = vmatprep.subr.bf16.mxu0 %v505_v4  ;;  %vm506_vm0 = vmmov 0   ;;  %v507_v6 = vmov 0.0   ;;  %v508_v23 = vmov 2102212464   ;;  %vm176_vm13 = vcmask 130048  }
  0x15   :  { %45 = vperm.xlu0 %444, %v41_v1   ;;  %v412_v5 = vpack.c.bf16 %v168_v3, %v167_v2  ;;  %389 = vmatprep.mubr.msk.f32.mxu0 %vm506_vm0, %v507_v6  ;;  %v362_v7 = vld [vmem:[%s626_s0] ss:$0 sm:$0xff]  ;;  %v509_v25 = vmov 920167782   ;;  %v510_v29 = vmov 1326507024  }
  0x16   :  { %414 = vmatprep.subr.bf16.mxu1 %v505_v4  ;;  %408 = vmatprep.mubr.msk.f32.mxu1 %vm506_vm0, %v507_v6  ;;  %v363_v8 = vld [vmem:[%s627_s1] ss:$0 sm:$0xff]  ;;  %v511_v31 = vmov 683565275   ;;  %v512_v33 = vmov 2475754826  }
  0x17   :  { %413 = vmatpush3.bf16.msra.mxu0 %v412_v5  ;;  %v513_v36 = vmov 2131351028   ;;  %vm272_vm15 = vcmask 523264   ;;  %s514_s24 = smov [#allocation5]  }
  0x18   :  { %s353_s25 = sshll.u32 %s514_s24, 4  ;;  %s354_s25 = int_to_ptr.vmem [resolvable:$true] %s353_s25 }
  0x19   :  { %p480_p9 = scmp.lt.s32.totalorder %s354_s25, %s354_s25 }
  0x94   :  { %v46_v9 = vpop.permute.xlu0 %45 }
  0x95   :  { %v54_v10 = vmul.f32 %v362_v7, %v46_v9 }
  0x97   :  { %v584_v11 = vadd.f32 %v363_v8, %v54_v10 }
  0x99   :  { %v66_v12 = vand.u32 2139095040, %v584_v11  ;;  %v63_v13 = vand.u32 2147483647, %v584_v11  ;;  %vm65_vm8 = vcmp.lt.s32.totalorder %v584_v11, 0  ;;  %vm155_vm14 = vweird.f32 %v584_v11 }
  0x9b   :  { %v67_v14 = vshrl.u32 %v66_v12, 23  ;;  %v70_v16 = vand.u32 8388607, %v63_v13  ;;  %vm64_vm9 = vcmp.le.f32.partialorder %v63_v13, 0.7853982 }
  0x9d   :  { %v364_v15 = vadd.s32 4294967169, %v67_v14  ;;  %v71_v19 = vor.u32 8388608, %v70_v16 }
  0x9f   :  { %v73_v17 = vadd.s32 1, %v364_v15  ;;  %v111_v27 = vshll.u32 %v71_v19, 8 }
  0xa1   :  { %vm74_vm1 = vcmp.gt.s32.totalorder %v73_v17, 0 }
  0xa2   :  { %v75_v18 = vsel %vm74_vm1, %v73_v17, 0 }
  0xa3   :  { %v77_v20 = vand.u32 31, %v75_v18  ;;  %v76_v21 = vshrl.u32 %v75_v18, 5 }
  0xa5   :  { %v78_v22 = vsub.s32 32, %v77_v20  ;;  %v89_v24 = vshll.u32 %v508_v23, %v77_v20  ;;  %v92_v26 = vshll.u32 %v509_v25, %v77_v20  ;;  %v80_v32 = vshll.u32 %v511_v31, %v77_v20 }
  0xa6   :  { %v83_v35 = vshll.u32 %v512_v33, %v77_v20  ;;  %v86_v38 = vshll.u32 %v513_v36, %v77_v20  ;;  %vm98_vm2 = vcmp.lt.s32.totalorder %v76_v21, 4  ;;  %vm95_vm3 = vcmp.lt.s32.totalorder %v76_v21, 1 }
  0xa7   :  { %v90_v28 = vshrl.u32 %v509_v25, %v78_v22  ;;  %v93_v30 = vshrl.u32 %v510_v29, %v78_v22  ;;  %v81_v34 = vshrl.u32 %v512_v33, %v78_v22  ;;  %v84_v37 = vshrl.u32 %v513_v36, %v78_v22 }
  0xa8   :  { %v87_v39 = vshrl.u32 %v508_v23, %v78_v22  ;;  %v79_v43 = vshrl.u32 %v511_v31, %v78_v22  ;;  %vm96_vm4 = vcmp.lt.s32.totalorder %v76_v21, 2  ;;  %vm97_vm5 = vcmp.lt.s32.totalorder %v76_v21, 3 }
  0xa9   :  { %v91_v40 = vor.u32 %v90_v28, %v89_v24  ;;  %v94_v41 = vor.u32 %v93_v30, %v92_v26  ;;  %v82_v42 = vor.u32 %v81_v34, %v80_v32  ;;  %v85_v44 = vor.u32 %v84_v37, %v83_v35 }
  0xaa   :  { %v88_v45 = vor.u32 %v87_v39, %v86_v38 }
  0xab   :  { %v104_v46 = vsel %vm98_vm2, %v91_v40, 920167782  ;;  %v108_v47 = vsel %vm98_vm2, %v94_v41, 1326507024  ;;  %v103_v49 = vsel %vm95_vm3, %v82_v42, %v85_v44  ;;  %v99_v52 = vsel %vm95_vm3, %v79_v43, %v82_v42  ;;  %v257_v41 = vld [vmem:[#allocation2] sm:$0xff]  ;;  %v258_v42 = vld [vmem:[#allocation2 + $0x8] sm:$0xff] }
  0xac   :  { %v100_v48 = vsel %vm98_vm2, %v88_v45, 2102212464  ;;  %v105_v50 = vsel %vm97_vm5, %v88_v45, %v104_v46  ;;  %v107_v51 = vsel %vm95_vm3, %v85_v44, %v88_v45  ;;  %v109_v55 = vsel %vm97_vm5, %v91_v40, %v108_v47  ;;  %v260_v45 = vld [vmem:[#allocation2 + $0x18] sm:$0xff]  ;;  %v261_v47 = vld [vmem:[#allocation2 + $0x20] sm:$0xff] }
  0xad   :  { %v101_v53 = vsel %vm97_vm5, %v85_v44, %v100_v48  ;;  %v106_v54 = vsel %vm96_vm4, %v103_v49, %v105_v50  ;;  %v110_v56 = vsel %vm96_vm4, %v107_v51, %v109_v55  ;;  %v415_v43 = vpack.c.bf16 %v258_v42, %v257_v41  ;;  %v259_v44 = vld [vmem:[#allocation2 + $0x10] sm:$0xff]  ;;  %v262_v48 = vld [vmem:[#allocation2 + $0x28] sm:$0xff]  ;;  %v264_v50 = vld [vmem:[#allocation2 + $0x38] sm:$0xff] }
  0xae   :  { %v590_v57 = vmul.u32.u64.low %v111_v27, %v106_v54  ;;  %v591_v58 = vmul.u32.u64.high %v111_v27, %v106_v54, %v590_v57  ;;  %v593_v59 = vmul.u32.u64.low %v111_v27, %v110_v56  ;;  %v594_v60 = vmul.u32.u64.high %v111_v27, %v110_v56, %v593_v59 }
  0xaf   :  { %v102_v61 = vsel %vm96_vm4, %v99_v52, %v101_v53  ;;  %416 = vmatpush3.bf16.msra.mxu1 %v415_v43  ;;  %v418_v46 = vpack.c.bf16 %v260_v45, %v259_v44  ;;  %v421_v49 = vpack.c.bf16 %v262_v48, %v261_v47  ;;  %v368_v52 = vld [vmem:[%s630_s4] ss:$0 sm:$0xff]  ;;  %s475_s4 = scalar_lea.vmem %s354_s25, 128 }
  0xb0   :  { %v121_v62 = vadd.s32 1, %v591_v58  ;;  %v118_v63 = vmul.u32 %v111_v27, %v102_v61  ;;  %vm120_vm6 = vc.u32 %v594_v60, %v590_v57  ;;  %v119_v14 = vadd.s32 %v590_v57, %v594_v60  ;;  %417 = vmatprep.subr.bf16.mxu1 %v505_v4  ;;  %p476_p8 = scmp.ne.s32.totalorder %s354_s25, %s475_s4  ;;  %p481_p10 = scmp.lt.s32.totalorder %s475_s4, %s475_s4 }
  0xb2   :  { %v122_v0 = vsel %vm120_vm6, %v121_v62, %v591_v58  ;;  %p482_p11 = por %p481_p10, %p480_p9 }
  0xb3   :  { %v123_v1 = vadd.s32 %v122_v0, %v118_v63  ;;  %419 = vmatpush3.bf16.msra.mxu1 %v418_v46 }
  0xb4   :  { %420 = vmatprep.subr.bf16.mxu1 %v505_v4  ;;  %p483_p12 = pnand %p482_p11, %p476_p8 }
  0xb5   :  { %v124_v2 = vadd.s32 536870912, %v123_v1 }
  0xb7   :  { %v125_v3 = vshrl.u32 %v124_v2, 30  ;;  %422 = vmatpush3.bf16.msra.mxu1 %v421_v49 }
  0xb8   :  { %423 = vmatprep.subr.bf16.mxu1 %v505_v4  ;;  %v371_v4 = vld [vmem:[%s632_s6] ss:$0 sm:$0xff] }
  0xb9   :  { %v126_v5 = vshll.u32 %v125_v3, 30  ;;  %v149_v26 = vsub.s32 4, %v125_v3 }
  0xbb   :  { %v127_v6 = vsub.s32 %v123_v1, %v126_v5  ;;  %v150_v29 = vsel %vm65_vm8, %v149_v26, %v125_v3 }
  0xbc   :  { %v152_v31 = vsel %vm64_vm9, 0, %v150_v29 }
  0xbd   :  { %v129_v7 = vsub.s32 0, %v127_v6  ;;  %v156_v32 = vadd.s32 3, %v152_v31 }
  0xbf   :  { %v365_v8 = vmin.u32 %v129_v7, %v127_v6  ;;  %v157_v33 = vand.u32 3, %v156_v32 }
  0xc1   :  { %v131_v9 = vclz %v365_v8  ;;  %vm162_vm10 = vcmp.eq.s32.totalorder %v157_v33, 2  ;;  %vm159_vm11 = vcmp.eq.s32.totalorder %v157_v33, 0  ;;  %vm158_vm12 = vcmp.lt.s32.totalorder %v157_v33, 2 }
  0xc3   :  { %v366_v10 = vadd.s32 4294967294, %v131_v9 }
  0xc5   :  { %vm367_vm7 = vcmp.lt.s32.totalorder %v366_v10, 0 }
  0xc6   :  { %v134_v12 = vsel %vm367_vm7, 0, %v366_v10 }
  0xc7   :  { %v135_v15 = vsub.s32 32, %v134_v12  ;;  %v139_v16 = vsub.s32 4294967266, %v134_v12  ;;  %v136_v17 = vshll.u32 %v127_v6, %v134_v12 }
  0xc9   :  { %v137_v18 = vshrl.u32 %v119_v14, %v135_v15  ;;  %v140_v19 = vadd.s32 127, %v139_v16 }
  0xcb   :  { %v138_v20 = vor.u32 %v137_v18, %v136_v17  ;;  %v141_v21 = vshll.u32 %v140_v19, 23 }
  0xcd   :  { %v142_v22 = vor.u32 4788187, %v141_v21  ;;  %v145_v24 = vcvt.s32.f32 %v138_v20 }
  0xcf   :  { %v143_v23 = vand.u32 2147483647, %v142_v22 }
  0xd1   :  { %v146_v25 = vmul.f32 %v145_v24, %v143_v23 }
  0xd3   :  { %v147_v27 = vxor.u32 2147483648, %v146_v25 }
  0xd5   :  { %v148_v28 = vsel %vm65_vm8, %v147_v27, %v146_v25 }
  0xd6   :  { %v151_v30 = vsel %vm64_vm9, %v584_v11, %v148_v28  ;;  %v263_v11 = vld [vmem:[#allocation2 + $0x30] sm:$0xff] }
  0xd7   :  { %445 = vcosq.f32 %v151_v30  ;;  %v424_v51 = vpack.c.bf16 %v264_v50, %v263_v11 }
  0xd8   :  { %447 = vsinq.f32 %v151_v30 }
  0xd9   :  { %425 = vmatpush3.bf16.msra.mxu1 %v424_v51 }
  0xe1   :  { %v446_v34 = vpop.eup %445 }
  0xe2   :  { %v448_v35 = vpop.eup %447  ;;  %v163_v36 = vxor.u32 2147483648, %v446_v34 }
  0xe3   :  { %v160_v37 = vxor.u32 2147483648, %v448_v35 }
  0xe4   :  { %v164_v38 = vsel %vm162_vm10, %v163_v36, %v448_v35 }
  0xe5   :  { %v161_v39 = vsel %vm159_vm11, %v446_v34, %v160_v37 }
  0xe6   :  { %v165_v13 = vsel %vm158_vm12, %v161_v39, %v164_v38 }
  0xe7   :  { %v166_v40 = vsel %vm155_vm14, nan, %v165_v13 }
  0xe8   :  { %390 = vmatmul.mubr.msk.f32.vlgmr.msra.gmra.mrb[0].mxu0 %vm176_vm13, %v166_v40 }
 0x1bb   :  { %v246_v53 = vpop.f32.mrb[0].mxu0 }
 0x1bc   :  { %v247_v54 = vadd.f32 %v368_v52, %v246_v53  ;;  %v391_v55 = vpop.f32.mrb[1].mxu0 }
 0x1be   :  { %v370_v56 = vmul.f32 -1.442695, %v247_v54 }
 0x1c0   :  { %449 = vpow2.f32 %v370_v56 }
 0x1ca   :  { %v450_v57 = vpop.eup %449 }
 0x1cb   :  { %v253_v58 = vadd.f32 1.0, %v450_v57 }
 0x1cd   :  { %451 = vrcp.f32 %v253_v58 }
 0x1d7   :  { %v452_v59 = vpop.eup %451 }
 0x1d8   :  { %v256_v60 = vmul.f32 %v452_v59, %v247_v54 }
 0x1da   :  { %409 = vmatmul.mubr.msk.f32.vlgmr.msra.gmra.mrb[0].mxu1 %vm272_vm15, %v256_v60 }
 0x2ad   :  { %v342_v61 = vpop.f32.mrb[0].mxu1 }
 0x2ae   :  { %v343_v62 = vadd.f32 %v371_v4, %v342_v61  ;;  %v410_v63 = vpop.f32.mrb[1].mxu1 }
 0x2b0   :  { %346 = vst.msk [vmem:[#allocation5] sm:$0xff] %vm272_vm15, %v343_v62 }
 0x2b1   :  { %486 = shalt.err (!%p483_p12)
}
 0x2b2   :  { %s487_s28 = scalar_lea.hbm %s633_s7, 128 }
 0x2b3   :  { %p488_p13 = scmp.ne.s32.totalorder %s633_s7, %s487_s28  ;;  %p491_p0 = scmp.lt.u32.totalorder %s487_s28, %s633_s7 }
 0x2b5   :  { %p493_p1 = pnand %p491_p0, %p488_p13 }
 0x2b7   :  { %496 = shalt.err (!%p493_p1)
}
 0x2b8   :  { %356 = dma.vmem_to_hbm [thread:$0]  %s354_s25, 128, %s633_s7, [#allocation4]  }
 0x2b9   :  { %499 = dma.done.wait [#allocation4], 128  }
 0x2ba   :  { %500 = vsyncadd [#allocation4], 4294967168 }
 0x2bb   :  { %360 = vsyncpa [#allocation3], 1 }
 0x2bc   :  { %361 = vsyncpa [#allocation4], 1 }

</bundles_post_ra>
